<compile_context>
chip_gen: v6e
topology: v6e:2x2x1
jax: 0.10.0
libtpu: 0.0.40
codegen_flags: <defaults>
</compile_context>

<pallas_src>
import functools

import jax
import jax.numpy as jnp
from jax.experimental import pallas as pl
from jax.experimental.pallas import tpu as pltpu


def _round_up(v, m):
    return (v + m - 1) // m * m


# ----------------------------------------------------------------------------
# Pallas kernels
# ----------------------------------------------------------------------------
def _matmul_kernel(a_ref, b_ref, o_ref, *, activation):
    acc = jnp.dot(a_ref[...], b_ref[...], preferred_element_type=jnp.float32)
    if activation == "tanh":
        acc = jnp.tanh(acc)
    o_ref[...] = acc


def pallas_matmul(a, b, activation="none", tm_max=512):
    """(M, K) @ (K, Np) -> (M, Np) f32.

    bf16 MXU inputs, f32 accumulation.  Np must be a multiple of 128 (caller
    pads the weight) so every output store is lane-dense.  Tiled over M with a
    parallel grid axis: DMA/compute pipelining + both TensorCores on v7x.
    """
    M, K = a.shape
    Kb, Np = b.shape
    assert K == Kb and Np % 128 == 0
    a = a.astype(jnp.bfloat16)
    b = b.astype(jnp.bfloat16)
    tm = M if M <= tm_max else tm_max          # tm_max is a multiple of 8
    grid = (pl.cdiv(M, tm),)
    kern = functools.partial(_matmul_kernel, activation=activation)
    return pl.pallas_call(
        kern,
        out_shape=jax.ShapeDtypeStruct((M, Np), jnp.float32),
        grid=grid,
        in_specs=[pl.BlockSpec((tm, K), lambda i: (i, 0)),
                  pl.BlockSpec((K, Np), lambda i: (0, 0))],
        out_specs=pl.BlockSpec((tm, Np), lambda i: (i, 0)),
        compiler_params=pltpu.CompilerParams(
            dimension_semantics=("parallel",)),
    )(a, b)


def _inorm_kernel(*refs, relu, eps, inv_hw, has_residual):
    if has_residual:
        x_ref, g_ref, b_ref, r_ref, o_ref = refs
    else:
        x_ref, g_ref, b_ref, o_ref = refs
    x = x_ref[...]                                       # (rt, HW), HW on lanes
    mean = jnp.sum(x, axis=-1, keepdims=True) * inv_hw   # single pass
    msq = jnp.sum(x * x, axis=-1, keepdims=True) * inv_hw
    var = jnp.maximum(msq - mean * mean, 0.0)
    y = (x - mean) * jax.lax.rsqrt(var + eps)
    y = y * g_ref[...] + b_ref[...]                      # (rt, 1) broadcast
    if relu:
        y = jnp.maximum(y, 0.0)
    if has_residual:
        y = y + r_ref[...]                               # fused residual add
    o_ref[...] = y


def pallas_instance_norm(x, gamma, beta, relu=False, residual=None, eps=1e-5):
    """x: (N, H, W, C) NHWC. Per-(n, c) normalization over H*W.

    Runs in an (N*C, H*W) layout: full vector lanes, unmasked stores, XLU
    reduction.  Optionally fuses a trailing residual add (ResidualBlock).
    """
    N, H, W, C = x.shape
    HW = H * W
    rows = N * C
    xr = jnp.transpose(x, (0, 3, 1, 2)).reshape(rows, HW)
    g = jnp.tile(gamma.astype(jnp.float32), N).reshape(rows, 1)
    b = jnp.tile(beta.astype(jnp.float32), N).reshape(rows, 1)

    # Bounded row tile so blocks stay well inside scoped VMEM (v5e/v7x safe).
    cap = max(8, (2 * 1024 * 1024 // (HW * 4)) // 8 * 8)
    rt = rows if rows <= cap else cap
    grid = (pl.cdiv(rows, rt),)

    operands = [xr, g, b]
    in_specs = [pl.BlockSpec((rt, HW), lambda i: (i, 0)),
                pl.BlockSpec((rt, 1), lambda i: (i, 0)),
                pl.BlockSpec((rt, 1), lambda i: (i, 0))]
    has_residual = residual is not None
    if has_residual:
        rr = jnp.transpose(residual, (0, 3, 1, 2)).reshape(rows, HW)
        operands.append(rr.astype(jnp.float32))
        in_specs.append(pl.BlockSpec((rt, HW), lambda i: (i, 0)))

    kern = functools.partial(_inorm_kernel, relu=relu, eps=eps,
                             inv_hw=1.0 / HW, has_residual=has_residual)
    out = pl.pallas_call(
        kern,
        out_shape=jax.ShapeDtypeStruct((rows, HW), jnp.float32),
        grid=grid,
        in_specs=in_specs,
        out_specs=pl.BlockSpec((rt, HW), lambda i: (i, 0)),
        compiler_params=pltpu.CompilerParams(
            dimension_semantics=("parallel",)),
    )(*operands)
    return jnp.transpose(out.reshape(N, C, H, W), (0, 2, 3, 1))


# ----------------------------------------------------------------------------
# Conv wrappers (im2col is layout glue; the matmul hot path runs in Pallas)
# ----------------------------------------------------------------------------
def _im2col(x, kh, kw, stride, padding):
    """NHWC -> (N*Ho*Wo, kh*kw*Cin) patch matrix (tap-major, cin-minor)."""
    N, H, W, Cin = x.shape
    xp = jnp.pad(x, ((0, 0), (padding, padding), (padding, padding), (0, 0)))
    Ho = (H + 2 * padding - kh) // stride + 1
    Wo = (W + 2 * padding - kw) // stride + 1
    cols = []
    for i in range(kh):
        for j in range(kw):
            cols.append(xp[:,
                           i: i + (Ho - 1) * stride + 1: stride,
                           j: j + (Wo - 1) * stride + 1: stride, :])
    patches = jnp.concatenate(cols, axis=-1)
    return patches.reshape(N * Ho * Wo, kh * kw * Cin), Ho, Wo


def conv2d(x, wm, cout, kh, kw, stride, padding, activation="none"):
    """x: NHWC; wm: pre-transformed (kh*kw*Cin, Np) bf16 weight; no bias."""
    # TODO(synk): fold the kh*kw tap loop into the matmul grid (element-offset
    # index_map on the padded input) to avoid materializing im2col patches in
    # HBM for the large-resolution case.
    N = x.shape[0]
    patches, Ho, Wo = _im2col(x, kh, kw, stride, padding)
    out = pallas_matmul(patches, wm, activation=activation)
    return out[:, :cout].reshape(N, Ho, Wo, cout)


# ConvTranspose2d(k=4, s=2, p=1): output phase a (resp. b) uses these
# (kernel tap, input offset) pairs along y (resp. x).
_PHASE_TAPS = {0: ((1, 0), (3, -1)), 1: ((0, 1), (2, 0))}


def conv_transpose2d(x, phase_wms, cout):
    """ConvTranspose2d(kernel=4, stride=2, padding=1) via sub-pixel phases.

    Each of the 4 output phases (a, b) is a 4-tap stride-1 conv on the
    original (undilated) input — no structural-zero MACs.
    """
    N, H, W, Cin = x.shape
    xp = jnp.pad(x, ((0, 0), (1, 1), (1, 1), (0, 0)))
    out = jnp.zeros((N, 2 * H, 2 * W, cout), jnp.float32)
    for a in (0, 1):
        for b in (0, 1):
            cols = []
            for (_, dy) in _PHASE_TAPS[a]:
                for (_, dx) in _PHASE_TAPS[b]:
                    cols.append(xp[:, 1 + dy: 1 + dy + H,
                                   1 + dx: 1 + dx + W, :])
            patches = jnp.concatenate(cols, axis=-1).reshape(N * H * W,
                                                             4 * Cin)
            ph = pallas_matmul(patches, phase_wms[a][b])
            ph = ph[:, :cout].reshape(N, H, W, cout)
            out = out.at[:, a::2, b::2, :].set(ph)
    return out


# ----------------------------------------------------------------------------
# Weight pre-transformation (done once at init, not per forward)
# ----------------------------------------------------------------------------
def _conv_weight_matrix(w):
    """(Cout, Cin, kh, kw) conv weight -> (kh*kw*Cin, Np) bf16, Np padded to 128."""
    cout, cin, kh, kw = w.shape
    wm = jnp.transpose(w, (2, 3, 1, 0)).reshape(kh * kw * cin, cout)
    wm = jnp.pad(wm, ((0, 0), (0, _round_up(cout, 128) - cout)))
    return wm.astype(jnp.bfloat16)


def _convt_phase_matrices(w):
    """(Cin, Cout, 4, 4) ConvTranspose2d weight -> {a: {b: (4*Cin, Np) bf16}}."""
    cin, cout, kh, kw = w.shape
    npad = _round_up(cout, 128) - cout
    mats = {}
    for a in (0, 1):
        mats[a] = {}
        for b in (0, 1):
            blocks = []
            for (ky, _) in _PHASE_TAPS[a]:
                for (kx, _) in _PHASE_TAPS[b]:
                    blocks.append(w[:, :, ky, kx])          # (Cin, Cout)
            wm = jnp.concatenate(blocks, axis=0)            # (4*Cin, Cout)
            wm = jnp.pad(wm, ((0, 0), (0, npad)))
            mats[a][b] = wm.astype(jnp.bfloat16)
    return mats


# ----------------------------------------------------------------------------
# Generator: parameters + forward
# ----------------------------------------------------------------------------
def init_params(key, conv_dim=8, c_dim=3, repeat_num=2):
    p = {}

    def nxt():
        nonlocal key
        key, sub = jax.random.split(key)
        return sub

    def conv_w(cout, cin, k):
        fan_in = cin * k * k
        return (jax.random.normal(nxt(), (cout, cin, k, k), jnp.float32)
                / jnp.sqrt(fan_in))

    def in_params(c):
        g = 1.0 + 0.1 * jax.random.normal(nxt(), (c,), jnp.float32)
        b = 0.1 * jax.random.normal(nxt(), (c,), jnp.float32)
        return g, b

    p['c1_w'] = _conv_weight_matrix(conv_w(conv_dim, 3 + c_dim, 7))
    p['in1_g'], p['in1_b'] = in_params(conv_dim)
    curr = conv_dim
    for i in range(2):
        p[f'down{i}_w'] = _conv_weight_matrix(conv_w(curr * 2, curr, 4))
        p[f'down{i}_g'], p[f'down{i}_b'] = in_params(curr * 2)
        curr *= 2
    for i in range(repeat_num):
        p[f'res{i}_w1'] = _conv_weight_matrix(conv_w(curr, curr, 3))
        p[f'res{i}_g1'], p[f'res{i}_b1'] = in_params(curr)
        p[f'res{i}_w2'] = _conv_weight_matrix(conv_w(curr, curr, 3))
        p[f'res{i}_g2'], p[f'res{i}_b2'] = in_params(curr)
    for i in range(2):
        fan_in = curr * 4 * 4
        wt = (jax.random.normal(nxt(), (curr, curr // 2, 4, 4), jnp.float32)
              / jnp.sqrt(fan_in))
        p[f'up{i}_w'] = _convt_phase_matrices(wt)
        p[f'up{i}_g'], p[f'up{i}_b'] = in_params(curr // 2)
        curr //= 2
    p['c2_w'] = _conv_weight_matrix(conv_w(3, curr, 7))
    return p


def generator_forward(params, x_nchw, maps_nchw, conv_dim=8, repeat_num=2):
    p = params
    x = jnp.concatenate([x_nchw, maps_nchw], axis=1)           # cat on C (NCHW)
    x = jnp.transpose(x, (0, 2, 3, 1)).astype(jnp.float32)     # NCHW -> NHWC

    curr = conv_dim
    x = conv2d(x, p['c1_w'], curr, 7, 7, stride=1, padding=3)
    x = pallas_instance_norm(x, p['in1_g'], p['in1_b'], relu=True)

    for i in range(2):                                         # downsampling
        x = conv2d(x, p[f'down{i}_w'], curr * 2, 4, 4, stride=2, padding=1)
        x = pallas_instance_norm(x, p[f'down{i}_g'], p[f'down{i}_b'],
                                 relu=True)
        curr *= 2

    for i in range(repeat_num):                                # residual blocks
        h = conv2d(x, p[f'res{i}_w1'], curr, 3, 3, stride=1, padding=1)
        h = pallas_instance_norm(h, p[f'res{i}_g1'], p[f'res{i}_b1'],
                                 relu=True)
        h = conv2d(h, p[f'res{i}_w2'], curr, 3, 3, stride=1, padding=1)
        # InstanceNorm + residual add fused into one kernel.
        x = pallas_instance_norm(h, p[f'res{i}_g2'], p[f'res{i}_b2'],
                                 relu=False, residual=x)

    for i in range(2):                                         # upsampling
        x = conv_transpose2d(x, p[f'up{i}_w'], curr // 2)
        x = pallas_instance_norm(x, p[f'up{i}_g'], p[f'up{i}_b'], relu=True)
        curr //= 2

    # Final 7x7 conv with tanh fused into the matmul epilogue.
    x = conv2d(x, p['c2_w'], 3, 7, 7, stride=1, padding=3, activation="tanh")
    return jnp.transpose(x, (0, 3, 1, 2))                      # NHWC -> NCHW


if __name__ == "__main__":
    conv_dim, c_dim, repeat_num = 8, 3, 2
    key = jax.random.PRNGKey(0)
    kx, km, kp = jax.random.split(key, 3)
    x = jax.random.normal(kx, (2, 3, 16, 16), jnp.float32)
    maps = jax.random.normal(km, (2, c_dim, 16, 16), jnp.float32)
    params = init_params(kp, conv_dim=conv_dim, c_dim=c_dim,
                         repeat_num=repeat_num)

    out = generator_forward(params, x, maps, conv_dim=conv_dim,
                            repeat_num=repeat_num)
    out = jax.block_until_ready(out)

    assert out.shape == (2, 3, 16, 16), out.shape
    assert out.dtype == jnp.float32
    assert bool(jnp.all(jnp.isfinite(out)))
    assert bool(jnp.all(jnp.abs(out) <= 1.0))  # tanh range
    print("KERNEL_OK")
</pallas_src>

<mosaic_0001>
module attributes {stable_mosaic.version = 11 : i64} {
  func.func @_matmul_kernel(%arg0: i32, %arg1: memref<512x294xbf16, #tpu.memory_space<vmem>>, %arg2: memref<294x128xbf16, #tpu.memory_space<vmem>>, %arg3: memref<512x128xf32, #tpu.memory_space<vmem>>) attributes {dimension_semantics = [#tpu.dimension_semantics<parallel>], iteration_bounds = array<i64: 1>, scalar_prefetch = 0 : i64, scratch_operands = 0 : i64, tpu.core_type = #tpu.core_type<tc>, window_params = [{transform_indices = @transform_0, window_bounds = array<i64: 512, 294>}, {pipeline_mode = #tpu.pipeline_mode<synchronous>, transform_indices = @transform_1, window_bounds = array<i64: 294, 128>}, {transform_indices = @transform_2, window_bounds = array<i64: 512, 128>}]} {
    %c0 = arith.constant 0 : index
    %c0_0 = arith.constant 0 : index
    %0 = vector.load %arg1[%c0, %c0_0] : memref<512x294xbf16, #tpu.memory_space<vmem>>, vector<512x294xbf16>
    %c0_1 = arith.constant 0 : index
    %c0_2 = arith.constant 0 : index
    %1 = vector.load %arg2[%c0_1, %c0_2] : memref<294x128xbf16, #tpu.memory_space<vmem>>, vector<294x128xbf16>
    %cst = arith.constant dense<0.000000e+00> : vector<512x128xf32>
    %2 = tpu.matmul %0, %1, %cst {dimension_numbers = #tpu.dot_dimension_numbers<[1], [0], [0], [1], [0, 0, 1, 1], [], []>} : vector<512x294xbf16>, vector<294x128xbf16>, vector<512x128xf32> -> vector<512x128xf32>
    %c0_3 = arith.constant 0 : index
    %c0_4 = arith.constant 0 : index
    %3 = vector.load %arg3[%c0_3, %c0_4] : memref<512x128xf32, #tpu.memory_space<vmem>>, vector<512x128xf32>
    tpu.vector_store %arg3[%c0_3, %c0_4], %2 {strides = array<i32>} : memref<512x128xf32, #tpu.memory_space<vmem>>, vector<512x128xf32>,
    return
  }
  func.func @transform_0(%arg0: i32) -> (i32, i32) {
    %c0_i32 = arith.constant 0 : i32
    %c0_i32_0 = arith.constant 0 : i32
    return %arg0, %c0_i32 : i32, i32
  }
  func.func @transform_1(%arg0: i32) -> (i32, i32) {
    %c0_i32 = arith.constant 0 : i32
    %c0_i32_0 = arith.constant 0 : i32
    %c0_i32_1 = arith.constant 0 : i32
    return %c0_i32, %c0_i32_0 : i32, i32
  }
  func.func @transform_2(%arg0: i32) -> (i32, i32) {
    %c0_i32 = arith.constant 0 : i32
    %c0_i32_0 = arith.constant 0 : i32
    return %arg0, %c0_i32 : i32, i32
  }
}

</mosaic_0001>

<bundles_post_ra>
// kernel: tpu_custom_call.1
= control target key start
LH: loop header
LB: loop body
LE: loop exit
PB: predicated region body
PF: predicated region fallthrough
CT: control target
= control target key end

     0   :  { %v1986_v1 = vmov 0   ;;  %vm866_vm0 = vcmask 1042432   ;;  %s2501_s0 = inlined_call_operand.vmem [shape: bf16[512,294], index: 0, kind: input, shape index: {}]   ;;  %s2502_s1 = inlined_call_operand.vmem [shape: bf16[294,128], index: 1, kind: input, shape index: {}]   ;;  %s2503_s2 = inlined_call_operand.hbm [shape: f32[512,128], index: 2, kind: output, shape index: {}]  }
   0x1   :  { %v1817_v0 = vld [vmem:[%s2502_s1 + $0x38] sm:$0xff]   ;;  %870 = vmatprep.subr.bf16.mxu0 %v1986_v1  ;;  %1780 = vmatprep.subr.bf16.mxu1 %v1986_v1  ;;  %v1818_v2 = vld [vmem:[%s2502_s1 + $0x30] sm:$0xff]   ;;  %v1819_v3 = vld [vmem:[%s2502_s1 + $0x28] sm:$0xff]  }
   0x2   :  { %871 = vmatpush1.bf16.msra.mxu0 %v1817_v0  ;;  %1796 = vmatpush1.bf16.msra.mxu1 %v1817_v0  ;;  %v1820_v4 = vld [vmem:[%s2502_s1 + $0x20] sm:$0xff]   ;;  %v1821_v5 = vld [vmem:[%s2502_s1 + $0x18] sm:$0xff]   ;;  %v1822_v7 = vld [vmem:[%s2502_s1 + $0x10] sm:$0xff]  }
   0x3   :  { %872 = vmatprep.subr.bf16.mxu0 %v1986_v1  ;;  %1781 = vmatprep.subr.bf16.mxu1 %v1986_v1  ;;  %v1835_v6 = vld [vmem:[%s2501_s0 + $0x4] ss:$12 sps:$4 sm:$0xff]   ;;  %v1823_v9 = vld [vmem:[%s2502_s1 + $0x8] sm:$0xff]   ;;  %v1825_v11 = vld [vmem:[%s2502_s1 + $0x78] sm:$0xff]  }
   0x4   :  { %v1838_v8 = vld [vmem:[%s2501_s0 + $0x244] ss:$12 sps:$4 sm:$0xff]   ;;  %902 = vmatprep.mubr.bf16.mxu0 %v1835_v6  ;;  %v1827_v13 = vld [vmem:[%s2502_s1 + $0x68] sm:$0xff]   ;;  %v1829_v15 = vld [vmem:[%s2502_s1 + $0x58] sm:$0xff]  }
   0x5   :  { %1094 = vmatprep.mubr.bf16.mxu1 %v1838_v8  ;;  %v1824_v10 = vld [vmem:[%s2502_s1] sm:$0xff]   ;;  %v1826_v12 = vld [vmem:[%s2502_s1 + $0x70] sm:$0xff]   ;;  %v1831_v17 = vld [vmem:[%s2502_s1 + $0x48] sm:$0xff]  }
   0x6   :  { %873 = vmatpush1.bf16.msra.mxu0 %v1818_v2  ;;  %1797 = vmatpush1.bf16.msra.mxu1 %v1818_v2  ;;  %v1828_v14 = vld [vmem:[%s2502_s1 + $0x60] sm:$0xff]   ;;  %v1830_v16 = vld [vmem:[%s2502_s1 + $0x50] sm:$0xff]   ;;  %v1840_v22 = vld [vmem:[%s2501_s0 + $0x1c] ss:$12 sps:$4 sm:$0xff]  }
   0x7   :  { %874 = vmatprep.subr.bf16.mxu0 %v1986_v1  ;;  %1782 = vmatprep.subr.bf16.mxu1 %v1986_v1  ;;  %v1832_v18 = vld [vmem:[%s2502_s1 + $0x40] sm:$0xff]   ;;  %v1839_v19 = vld [vmem:[%s2502_s1 + $0x90] ss:$0 sps:$4 sm:$0x77]   ;;  %v1842_v23 = vld [vmem:[%s2501_s0 + $0x25c] ss:$12 sps:$4 sm:$0xff]  }
   0x8   :  { %v1833_v20 = vld [vmem:[%s2501_s0] ss:$12 sps:$4 sm:$0xff]   ;;  %v868_v24 = vsel %vm866_vm0, %v1839_v19, 0  ;;  %v1844_v27 = vld [vmem:[%s2501_s0 + $0x18] ss:$12 sps:$4 sm:$0xff]  }
   0x9   :  { %v1836_v21 = vld [vmem:[%s2501_s0 + $0x240] ss:$12 sps:$4 sm:$0xff]   ;;  %v1845_v28 = vld [vmem:[%s2501_s0 + $0x258] ss:$12 sps:$4 sm:$0xff]   ;;  %v1850_v31 = vld [vmem:[%s2501_s0 + $0x30] ss:$12 sps:$4 sm:$0xff]  }
   0xa   :  { %875 = vmatpush1.bf16.msra.mxu0 %v1819_v3  ;;  %1798 = vmatpush1.bf16.msra.mxu1 %v1819_v3  ;;  %v1852_v25 = vld [vmem:[%s2502_s1 + $0x88] sm:$0xff]   ;;  %v1871_v26 = vld [vmem:[%s2502_s1 + $0x80] sm:$0xff]   ;;  %v1851_v32 = vld [vmem:[%s2501_s0 + $0x270] ss:$12 sps:$4 sm:$0xff]  }
   0xb   :  { %876 = vmatprep.subr.bf16.mxu0 %v1986_v1  ;;  %1783 = vmatprep.subr.bf16.mxu1 %v1986_v1  ;;  %v1846_v29 = vld [vmem:[%s2501_s0 + $0x34] ss:$12 sps:$4 sm:$0xff]   ;;  %v1853_v33 = vld [vmem:[%s2501_s0 + $0x4c] ss:$12 sps:$4 sm:$0xff]   ;;  %v1859_v37 = vld [vmem:[%s2501_s0 + $0x64] ss:$12 sps:$4 sm:$0xff]  }
   0xc   :  { %v1848_v30 = vld [vmem:[%s2501_s0 + $0x274] ss:$12 sps:$4 sm:$0xff]   ;;  %v1855_v34 = vld [vmem:[%s2501_s0 + $0x28c] ss:$12 sps:$4 sm:$0xff]   ;;  %v1861_v38 = vld [vmem:[%s2501_s0 + $0x2a4] ss:$12 sps:$4 sm:$0xff]  }
   0xd   :  { %v1857_v35 = vld [vmem:[%s2501_s0 + $0x48] ss:$12 sps:$4 sm:$0xff]  }
   0xe   :  { %877 = vmatpush1.bf16.msra.mxu0 %v1820_v4  ;;  %1799 = vmatpush1.bf16.msra.mxu1 %v1820_v4  ;;  %v1858_v36 = vld [vmem:[%s2501_s0 + $0x288] ss:$12 sps:$4 sm:$0xff]  }
   0xf   :  { %878 = vmatprep.subr.bf16.mxu0 %v1986_v1  ;;  %1784 = vmatprep.subr.bf16.mxu1 %v1986_v1 }
  0x12   :  { %879 = vmatpush1.bf16.msra.mxu0 %v1821_v5  ;;  %1800 = vmatpush1.bf16.msra.mxu1 %v1821_v5 }
  0x13   :  { %880 = vmatprep.subr.bf16.mxu0 %v1986_v1  ;;  %1785 = vmatprep.subr.bf16.mxu1 %v1986_v1 }
  0x16   :  { %881 = vmatpush1.bf16.msra.mxu0 %v1822_v7  ;;  %1801 = vmatpush1.bf16.msra.mxu1 %v1822_v7 }
  0x17   :  { %882 = vmatprep.subr.bf16.mxu0 %v1986_v1  ;;  %1786 = vmatprep.subr.bf16.mxu1 %v1986_v1 }
  0x1a   :  { %883 = vmatpush1.bf16.msra.mxu0 %v1823_v9  ;;  %1802 = vmatpush1.bf16.msra.mxu1 %v1823_v9 }
  0x1b   :  { %884 = vmatprep.subr.bf16.mxu0 %v1986_v1  ;;  %1787 = vmatprep.subr.bf16.mxu1 %v1986_v1 }
  0x1e   :  { %885 = vmatpush1.bf16.msra.mxu0 %v1824_v10  ;;  %1803 = vmatpush1.bf16.msra.mxu1 %v1824_v10 }
  0x1f   :  { %886 = vmatprep.subr.bf16.mxu0 %v1986_v1  ;;  %1788 = vmatprep.subr.bf16.mxu1 %v1986_v1 }
  0x22   :  { %887 = vmatpush2.bf16.msra.mxu0 %v1825_v11  ;;  %1804 = vmatpush2.bf16.msra.mxu1 %v1825_v11 }
  0x23   :  { %888 = vmatprep.subr.bf16.mxu0 %v1986_v1  ;;  %1789 = vmatprep.subr.bf16.mxu1 %v1986_v1 }
  0x26   :  { %889 = vmatpush2.bf16.msra.mxu0 %v1826_v12  ;;  %1805 = vmatpush2.bf16.msra.mxu1 %v1826_v12 }
  0x27   :  { %890 = vmatprep.subr.bf16.mxu0 %v1986_v1  ;;  %1790 = vmatprep.subr.bf16.mxu1 %v1986_v1 }
  0x2a   :  { %891 = vmatpush2.bf16.msra.mxu0 %v1827_v13  ;;  %1806 = vmatpush2.bf16.msra.mxu1 %v1827_v13 }
  0x2b   :  { %892 = vmatprep.subr.bf16.mxu0 %v1986_v1  ;;  %1791 = vmatprep.subr.bf16.mxu1 %v1986_v1 }
  0x2e   :  { %893 = vmatpush2.bf16.msra.mxu0 %v1828_v14  ;;  %1807 = vmatpush2.bf16.msra.mxu1 %v1828_v14 }
  0x2f   :  { %894 = vmatprep.subr.bf16.mxu0 %v1986_v1  ;;  %1792 = vmatprep.subr.bf16.mxu1 %v1986_v1 }
  0x32   :  { %895 = vmatpush2.bf16.msra.mxu0 %v1829_v15  ;;  %1808 = vmatpush2.bf16.msra.mxu1 %v1829_v15 }
  0x33   :  { %896 = vmatprep.subr.bf16.mxu0 %v1986_v1  ;;  %1793 = vmatprep.subr.bf16.mxu1 %v1986_v1 }
  0x36   :  { %897 = vmatpush2.bf16.msra.mxu0 %v1830_v16  ;;  %1809 = vmatpush2.bf16.msra.mxu1 %v1830_v16 }
  0x37   :  { %898 = vmatprep.subr.bf16.mxu0 %v1986_v1  ;;  %1794 = vmatprep.subr.bf16.mxu1 %v1986_v1 }
  0x3a   :  { %899 = vmatpush2.bf16.msra.mxu0 %v1831_v17  ;;  %1810 = vmatpush2.bf16.msra.mxu1 %v1831_v17 }
  0x3b   :  { %900 = vmatprep.subr.bf16.mxu0 %v1986_v1  ;;  %1795 = vmatprep.subr.bf16.mxu1 %v1986_v1 }
  0x3e   :  { %901 = vmatpush2.bf16.msra.mxu0 %v1832_v18  ;;  %1811 = vmatpush2.bf16.msra.mxu1 %v1832_v18 }
  0x3f   :  { %1812 = vmatprep.subr.msk.bf16.mxu1 %vm866_vm0, %v1839_v19 }
  0x41   :  { %903 = vmatmul.mubr.bf16.vlgmr.msra.gmra.mxu0 %v1833_v20  ;;  %1095 = vmatmul.mubr.bf16.vlgmr.msra.gmra.mxu1 %v1836_v21 }
  0x42   :  { %1711 = vmatpush3.bf16.msra.mxu1 %v868_v24  ;;  %910 = vmatprep.mubr.bf16.mxu0 %v1840_v22 }
  0x43   :  { %1102 = vmatprep.mubr.bf16.mxu1 %v1842_v23  ;;  %1712 = vmatprep.subr.bf16.mxu1 %v1852_v25 }
  0x46   :  { %1713 = vmatpush3.bf16.msra.mxu1 %v1852_v25 }
  0x47   :  { %1714 = vmatprep.subr.bf16.mxu1 %v1871_v26 }
  0x49   :  { %911 = vmatmul.mubr.bf16.gmra.mxu0 %v1844_v27  ;;  %1103 = vmatmul.mubr.bf16.gmra.mxu1 %v1845_v28 }
  0x4a   :  { %918 = vmatprep.mubr.bf16.mxu0 %v1846_v29  ;;  %1110 = vmatprep.mubr.bf16.mxu1 %v1848_v30 }
  0x4b   :  { %1715 = vmatpush3.bf16.msra.mxu1 %v1871_v26 }
  0x51   :  { %919 = vmatmul.mubr.bf16.gmra.mxu0 %v1850_v31  ;;  %1111 = vmatmul.mubr.bf16.gmra.mxu1 %v1851_v32 }
  0x52   :  { %926 = vmatprep.mubr.bf16.mxu0 %v1853_v33  ;;  %1118 = vmatprep.mubr.bf16.mxu1 %v1855_v34 }
  0x53   :  { %7 = vsyncpa [#allocation3], 0  ;;  %v1863_v39 = vld [vmem:[%s2501_s0 + $0x60] ss:$12 sps:$4 sm:$0xff]   ;;  %v1865_v41 = vld [vmem:[%s2501_s0 + $0x7c] ss:$12 sps:$4 sm:$0xff]  }
  0x54   :  { %v1864_v40 = vld [vmem:[%s2501_s0 + $0x2a0] ss:$12 sps:$4 sm:$0xff]   ;;  %v1867_v42 = vld [vmem:[%s2501_s0 + $0x2bc] ss:$12 sps:$4 sm:$0xff]   ;;  %v1869_v43 = vld [vmem:[%s2501_s0 + $0x78] ss:$12 sps:$4 sm:$0xff]  }
  0x55   :  { %v1870_v44 = vld [vmem:[%s2501_s0 + $0x2b8] ss:$12 sps:$4 sm:$0xff]   ;;  %v1872_v45 = vld [vmem:[%s2501_s0 + $0x94] ss:$12 sps:$4 sm:$0xff]   ;;  %v1876_v47 = vld [vmem:[%s2501_s0 + $0x90] ss:$12 sps:$4 sm:$0xff]  }
  0x56   :  { %v1874_v46 = vld [vmem:[%s2501_s0 + $0x2d4] ss:$12 sps:$4 sm:$0xff]   ;;  %v1877_v48 = vld [vmem:[%s2501_s0 + $0x2d0] ss:$12 sps:$4 sm:$0xff]   ;;  %v1878_v49 = vld [vmem:[%s2501_s0 + $0xac] ss:$12 sps:$4 sm:$0xff]  }
  0x57   :  { %v1880_v50 = vld [vmem:[%s2501_s0 + $0x2ec] ss:$12 sps:$4 sm:$0xff]   ;;  %v1882_v51 = vld [vmem:[%s2501_s0 + $0xa8] ss:$12 sps:$4 sm:$0xff]   ;;  %v1884_v53 = vld [vmem:[%s2501_s0 + $0xc4] ss:$12 sps:$4 sm:$0xff]  }
  0x58   :  { %v1883_v52 = vld [vmem:[%s2501_s0 + $0x2e8] ss:$12 sps:$4 sm:$0xff]   ;;  %vm769_vm1 = vcmask 310272   ;;  %v1887_v55 = vld [vmem:[%s2501_s0 + $0xc0] ss:$12 sps:$4 sm:$0xff]  }
  0x59   :  { %927 = vmatmul.mubr.bf16.gmra.mxu0 %v1857_v35  ;;  %1119 = vmatmul.mubr.bf16.gmra.mxu1 %v1858_v36  ;;  %v1886_v54 = vld [vmem:[%s2501_s0 + $0x8] ss:$12 sps:$4 sm:$0xff]   ;;  %v1888_v56 = vld [vmem:[%s2501_s0 + $0x20] ss:$12 sps:$4 sm:$0xff]   ;;  %v1891_v58 = vld [vmem:[%s2501_s0 + $0x38] ss:$12 sps:$4 sm:$0xff]  }
  0x5a   :  { %934 = vmatprep.mubr.bf16.mxu0 %v1859_v37  ;;  %1126 = vmatprep.mubr.bf16.mxu1 %v1861_v38  ;;  %v1889_v57 = vld [vmem:[%s2501_s0 + $0xdc] ss:$12 sps:$4 sm:$0xff]   ;;  %v1892_v59 = vld [vmem:[%s2501_s0 + $0xd8] ss:$12 sps:$4 sm:$0xff]   ;;  %v1894_v61 = vld [vmem:[%s2501_s0 + $0xf4] ss:$12 sps:$4 sm:$0xff]  }
  0x5b   :  { %v1893_v60 = vld [vmem:[%s2501_s0 + $0x50] ss:$12 sps:$4 sm:$0xff]   ;;  %v1896_v62 = vld [vmem:[%s2501_s0 + $0x68] ss:$12 sps:$4 sm:$0xff]   ;;  %v1898_v0 = vld [vmem:[%s2501_s0 + $0x80] ss:$12 sps:$4 sm:$0xff]  }
  0x5c   :  { %v1897_v63 = vld [vmem:[%s2501_s0 + $0xf0] ss:$12 sps:$4 sm:$0xff]   ;;  %v1899_v1 = vld [vmem:[%s2501_s0 + $0x10c] ss:$12 sps:$4 sm:$0xff]   ;;  %v1902_v3 = vld [vmem:[%s2501_s0 + $0x108] ss:$12 sps:$4 sm:$0xff]  }
  0x5d   :  { %v1901_v2 = vld [vmem:[%s2501_s0 + $0x98] ss:$12 sps:$4 sm:$0xff]   ;;  %v1903_v4 = vld [vmem:[%s2501_s0 + $0xb0] ss:$12 sps:$4 sm:$0xff]   ;;  %v1906_v6 = vld [vmem:[%s2501_s0 + $0xc8] ss:$12 sps:$4 sm:$0xff]  }
  0x5e   :  { %v1904_v5 = vld [vmem:[%s2501_s0 + $0x124] ss:$12 sps:$4 sm:$0xff]   ;;  %v1907_v7 = vld [vmem:[%s2501_s0 + $0x120] ss:$12 sps:$4 sm:$0xff]   ;;  %v1909_v9 = vld [vmem:[%s2501_s0 + $0x13c] ss:$12 sps:$4 sm:$0xff]  }
  0x5f   :  { %v1908_v8 = vld [vmem:[%s2501_s0 + $0xe0] ss:$12 sps:$4 sm:$0xff]   ;;  %v1911_v10 = vld [vmem:[%s2501_s0 + $0xf8] ss:$12 sps:$4 sm:$0xff]   ;;  %v1913_v12 = vld [vmem:[%s2501_s0 + $0x110] ss:$12 sps:$4 sm:$0xff]  }
  0x60   :  { %v1912_v11 = vld [vmem:[%s2501_s0 + $0x138] ss:$12 sps:$4 sm:$0xff]   ;;  %v1914_v13 = vld [vmem:[%s2501_s0 + $0x154] ss:$12 sps:$4 sm:$0xff]   ;;  %v1917_v15 = vld [vmem:[%s2501_s0 + $0x150] ss:$12 sps:$4 sm:$0xff]  }
  0x61   :  { %935 = vmatmul.mubr.bf16.gmra.mxu0 %v1863_v39  ;;  %1127 = vmatmul.mubr.bf16.gmra.mxu1 %v1864_v40  ;;  %v1916_v14 = vld [vmem:[%s2501_s0 + $0x128] ss:$12 sps:$4 sm:$0xff]   ;;  %v1918_v16 = vld [vmem:[%s2501_s0 + $0x140] ss:$12 sps:$4 sm:$0xff]   ;;  %v1921_v18 = vld [vmem:[%s2501_s0 + $0x158] ss:$12 sps:$4 sm:$0xff]  }
  0x62   :  { %942 = vmatprep.mubr.bf16.mxu0 %v1865_v41  ;;  %1134 = vmatprep.mubr.bf16.mxu1 %v1867_v42  ;;  %v1919_v17 = vld [vmem:[%s2501_s0 + $0x16c] ss:$12 sps:$4 sm:$0xff]   ;;  %v1922_v19 = vld [vmem:[%s2501_s0 + $0x168] ss:$12 sps:$4 sm:$0xff]   ;;  %v1923_v20 = vld [vmem:[%s2501_s0 + $0x170] ss:$12 sps:$4 sm:$0xff]  }
  0x63   :  { %v1924_v21 = vld [vmem:[%s2501_s0 + $0x184] ss:$12 sps:$4 sm:$0xff]   ;;  %v1926_v22 = vld [vmem:[%s2501_s0 + $0x188] ss:$12 sps:$4 sm:$0xff]   ;;  %v1927_v23 = vld [vmem:[%s2501_s0 + $0x180] ss:$12 sps:$4 sm:$0xff]  }
  0x64   :  { %v1928_v24 = vld [vmem:[%s2501_s0 + $0x1a0] ss:$12 sps:$4 sm:$0xff]   ;;  %v1929_v25 = vld [vmem:[%s2501_s0 + $0x19c] ss:$12 sps:$4 sm:$0xff]   ;;  %v1931_v26 = vld [vmem:[%s2501_s0 + $0x1b8] ss:$12 sps:$4 sm:$0xff]  }
  0x65   :  { %v1932_v27 = vld [vmem:[%s2501_s0 + $0x198] ss:$12 sps:$4 sm:$0xff]   ;;  %v1933_v28 = vld [vmem:[%s2501_s0 + $0x1d0] ss:$12 sps:$4 sm:$0xff]   ;;  %v1934_v29 = vld [vmem:[%s2501_s0 + $0x1b4] ss:$12 sps:$4 sm:$0xff]  }
  0x66   :  { %v1936_v30 = vld [vmem:[%s2501_s0 + $0x1e8] ss:$12 sps:$4 sm:$0xff]   ;;  %v1937_v31 = vld [vmem:[%s2501_s0 + $0x1b0] ss:$12 sps:$4 sm:$0xff]   ;;  %v1938_v32 = vld [vmem:[%s2501_s0 + $0x200] ss:$12 sps:$4 sm:$0xff]  }
  0x67   :  { %v1939_v33 = vld [vmem:[%s2501_s0 + $0x1cc] ss:$12 sps:$4 sm:$0xff]   ;;  %v1942_v35 = vld [vmem:[%s2501_s0 + $0x1c8] ss:$12 sps:$4 sm:$0xff]   ;;  %v1943_v36 = vld [vmem:[%s2501_s0 + $0x230] ss:$12 sps:$4 sm:$0xff]  }
  0x68   :  { %v1941_v34 = vld [vmem:[%s2501_s0 + $0x218] ss:$12 sps:$4 sm:$0xff]   ;;  %v1946_v38 = vld [vmem:[%s2501_s0 + $0x248] ss:$12 sps:$4 sm:$0xff]   ;;  %v1947_v39 = vld [vmem:[%s2501_s0 + $0x1e0] ss:$12 sps:$4 sm:$0xff]  }
  0x69   :  { %943 = vmatmul.mubr.bf16.gmra.mxu0 %v1869_v43  ;;  %1135 = vmatmul.mubr.bf16.gmra.mxu1 %v1870_v44  ;;  %v1944_v37 = vld [vmem:[%s2501_s0 + $0x1e4] ss:$12 sps:$4 sm:$0xff]   ;;  %v1948_v40 = vld [vmem:[%s2501_s0 + $0x260] ss:$12 sps:$4 sm:$0xff]   ;;  %v1949_v41 = vld [vmem:[%s2501_s0 + $0x1fc] ss:$12 sps:$4 sm:$0xff]  }
  0x6a   :  { %950 = vmatprep.mubr.bf16.mxu0 %v1872_v45  ;;  %1142 = vmatprep.mubr.bf16.mxu1 %v1874_v46  ;;  %v1951_v42 = vld [vmem:[%s2501_s0 + $0x278] ss:$12 sps:$4 sm:$0xff]   ;;  %v1953_v44 = vld [vmem:[%s2501_s0 + $0x290] ss:$12 sps:$4 sm:$0xff]   ;;  %v1954_v45 = vld [vmem:[%s2501_s0 + $0x214] ss:$12 sps:$4 sm:$0xff]  }
  0x6b   :  { %v1952_v43 = vld [vmem:[%s2501_s0 + $0x1f8] ss:$12 sps:$4 sm:$0xff]   ;;  %v1956_v46 = vld [vmem:[%s2501_s0 + $0x2a8] ss:$12 sps:$4 sm:$0xff]  }
  0x71   :  { %951 = vmatmul.mubr.bf16.gmra.mxu0 %v1876_v47  ;;  %1143 = vmatmul.mubr.bf16.gmra.mxu1 %v1877_v48  ;;  %v1957_v47 = vld [vmem:[%s2501_s0 + $0x210] ss:$12 sps:$4 sm:$0xff]   ;;  %v1958_v48 = vld [vmem:[%s2501_s0 + $0x2c0] ss:$12 sps:$4 sm:$0xff]  }
  0x72   :  { %958 = vmatprep.mubr.bf16.mxu0 %v1878_v49  ;;  %1150 = vmatprep.mubr.bf16.mxu1 %v1880_v50  ;;  %v1959_v49 = vld [vmem:[%s2501_s0 + $0x22c] ss:$12 sps:$4 sm:$0xff]  }
  0x73   :  { %v1961_v50 = vld [vmem:[%s2501_s0 + $0x2d8] ss:$12 sps:$4 sm:$0xff]  }
  0x79   :  { %959 = vmatmul.mubr.bf16.gmra.mxu0 %v1882_v51  ;;  %1151 = vmatmul.mubr.bf16.gmra.mxu1 %v1883_v52  ;;  %v1962_v51 = vld [vmem:[%s2501_s0 + $0x228] ss:$12 sps:$4 sm:$0xff]   ;;  %v1963_v52 = vld [vmem:[%s2501_s0 + $0x2f0] ss:$12 sps:$4 sm:$0xff]   ;;  %s1987_s0 = smov [#allocation2]  }
  0x7a   :  { %966 = vmatprep.mubr.bf16.mxu0 %v1884_v53  ;;  %1716 = vmatprep.mubr.msk.bf16.mxu1 %vm769_vm1, %v1886_v54  ;;  %s1517_s9 = sshll.u32 %s1987_s0, 4  ;;  %s1518_s9 = int_to_ptr.vmem [resolvable:$true] %s1517_s9 }
  0x7b   :  { %s1964_s10 = scalar_lea.vmem %s1518_s9, 8192  ;;  %p1969_p1 = scmp.lt.s32.totalorder %s1518_s9, %s1518_s9 }
  0x7c   :  { %p1965_p0 = scmp.ne.s32.totalorder %s1518_s9, %s1964_s10  ;;  %p1970_p2 = scmp.lt.s32.totalorder %s1964_s10, %s1964_s10 }
  0x7e   :  { %p1971_p3 = por %p1970_p2, %p1969_p1 }
  0x80   :  { %p1972_p4 = pnand %p1971_p3, %p1965_p0 }
  0x81   :  { %967 = vmatmul.mubr.bf16.gmra.mxu0 %v1887_v55  ;;  %1717 = vmatmul.mubr.msk.bf16.vlgmr.msra.gmra.mxu1 %vm769_vm1, %v1888_v56 }
  0x82   :  { %974 = vmatprep.mubr.bf16.mxu0 %v1889_v57  ;;  %1720 = vmatprep.mubr.msk.bf16.mxu1 %vm769_vm1, %v1891_v58 }
  0x89   :  { %975 = vmatmul.mubr.bf16.gmra.mxu0 %v1892_v59  ;;  %1721 = vmatmul.mubr.msk.bf16.gmra.mxu1 %vm769_vm1, %v1893_v60 }
  0x8a   :  { %982 = vmatprep.mubr.bf16.mxu0 %v1894_v61  ;;  %1724 = vmatprep.mubr.msk.bf16.mxu1 %vm769_vm1, %v1896_v62 }
  0x91   :  { %983 = vmatmul.mubr.bf16.gmra.mxu0 %v1897_v63  ;;  %1725 = vmatmul.mubr.msk.bf16.gmra.mxu1 %vm769_vm1, %v1898_v0 }
  0x92   :  { %990 = vmatprep.mubr.bf16.mxu0 %v1899_v1  ;;  %1728 = vmatprep.mubr.msk.bf16.mxu1 %vm769_vm1, %v1901_v2 }
  0x99   :  { %991 = vmatmul.mubr.bf16.gmra.mxu0 %v1902_v3  ;;  %1729 = vmatmul.mubr.msk.bf16.gmra.mxu1 %vm769_vm1, %v1903_v4 }
  0x9a   :  { %998 = vmatprep.mubr.bf16.mxu0 %v1904_v5  ;;  %1732 = vmatprep.mubr.msk.bf16.mxu1 %vm769_vm1, %v1906_v6 }
  0xa1   :  { %999 = vmatmul.mubr.bf16.gmra.mxu0 %v1907_v7  ;;  %1733 = vmatmul.mubr.msk.bf16.gmra.mxu1 %vm769_vm1, %v1908_v8 }
  0xa2   :  { %1006 = vmatprep.mubr.bf16.mxu0 %v1909_v9  ;;  %1736 = vmatprep.mubr.msk.bf16.mxu1 %vm769_vm1, %v1911_v10 }
  0xa9   :  { %1007 = vmatmul.mubr.bf16.gmra.mxu0 %v1912_v11  ;;  %1737 = vmatmul.mubr.msk.bf16.gmra.mxu1 %vm769_vm1, %v1913_v12 }
  0xaa   :  { %1014 = vmatprep.mubr.bf16.mxu0 %v1914_v13  ;;  %1740 = vmatprep.mubr.msk.bf16.mxu1 %vm769_vm1, %v1916_v14 }
  0xb1   :  { %1015 = vmatmul.mubr.bf16.gmra.mxu0 %v1917_v15  ;;  %1741 = vmatmul.mubr.msk.bf16.gmra.mxu1 %vm769_vm1, %v1918_v16 }
  0xb2   :  { %1022 = vmatprep.mubr.bf16.mxu0 %v1919_v17  ;;  %1744 = vmatprep.mubr.msk.bf16.mxu1 %vm769_vm1, %v1921_v18 }
  0xb9   :  { %1023 = vmatmul.mubr.bf16.gmra.mxu0 %v1922_v19  ;;  %1745 = vmatmul.mubr.msk.bf16.gmra.mxu1 %vm769_vm1, %v1923_v20 }
  0xba   :  { %1030 = vmatprep.mubr.bf16.mxu0 %v1924_v21  ;;  %1748 = vmatprep.mubr.msk.bf16.mxu1 %vm769_vm1, %v1926_v22 }
  0xc1   :  { %1031 = vmatmul.mubr.bf16.gmra.mxu0 %v1927_v23  ;;  %1749 = vmatmul.mubr.msk.bf16.gmra.mxu1 %vm769_vm1, %v1928_v24 }
  0xc2   :  { %1038 = vmatprep.mubr.bf16.mxu0 %v1929_v25  ;;  %1752 = vmatprep.mubr.msk.bf16.mxu1 %vm769_vm1, %v1931_v26 }
  0xc9   :  { %1039 = vmatmul.mubr.bf16.gmra.mxu0 %v1932_v27  ;;  %1753 = vmatmul.mubr.msk.bf16.gmra.mxu1 %vm769_vm1, %v1933_v28 }
  0xca   :  { %1046 = vmatprep.mubr.bf16.mxu0 %v1934_v29  ;;  %1756 = vmatprep.mubr.msk.bf16.mxu1 %vm769_vm1, %v1936_v30 }
  0xd1   :  { %1047 = vmatmul.mubr.bf16.gmra.mxu0 %v1937_v31  ;;  %1757 = vmatmul.mubr.msk.bf16.gmra.mxu1 %vm769_vm1, %v1938_v32 }
  0xd2   :  { %1054 = vmatprep.mubr.bf16.mxu0 %v1939_v33  ;;  %1760 = vmatprep.mubr.msk.bf16.mxu1 %vm769_vm1, %v1941_v34 }
  0xd9   :  { %1055 = vmatmul.mubr.bf16.gmra.mxu0 %v1942_v35  ;;  %1761 = vmatmul.mubr.msk.bf16.gmra.mxu1 %vm769_vm1, %v1943_v36 }
  0xda   :  { %1062 = vmatprep.mubr.bf16.mxu0 %v1944_v37  ;;  %1764 = vmatprep.mubr.msk.bf16.mxu1 %vm769_vm1, %v1946_v38 }
  0xe1   :  { %1063 = vmatmul.mubr.bf16.gmra.mxu0 %v1947_v39  ;;  %1765 = vmatmul.mubr.msk.bf16.gmra.mxu1 %vm769_vm1, %v1948_v40 }
  0xe2   :  { %1070 = vmatprep.mubr.bf16.mxu0 %v1949_v41  ;;  %1768 = vmatprep.mubr.msk.bf16.mxu1 %vm769_vm1, %v1951_v42 }
  0xe9   :  { %1071 = vmatmul.mubr.bf16.gmra.mxu0 %v1952_v43  ;;  %1769 = vmatmul.mubr.msk.bf16.gmra.mxu1 %vm769_vm1, %v1953_v44 }
  0xea   :  { %1078 = vmatprep.mubr.bf16.mxu0 %v1954_v45  ;;  %1772 = vmatprep.mubr.msk.bf16.mxu1 %vm769_vm1, %v1956_v46 }
  0xf1   :  { %1079 = vmatmul.mubr.bf16.gmra.mxu0 %v1957_v47  ;;  %1773 = vmatmul.mubr.msk.bf16.gmra.mxu1 %vm769_vm1, %v1958_v48 }
  0xf2   :  { %1086 = vmatprep.mubr.bf16.mxu0 %v1959_v49  ;;  %1776 = vmatprep.mubr.msk.bf16.mxu1 %vm769_vm1, %v1961_v50 }
  0xf9   :  { %1087 = vmatmul.mubr.bf16.gmra.mxu0 %v1962_v51  ;;  %1777 = vmatmul.mubr.msk.bf16.gmra.mxu1 %vm769_vm1, %v1963_v52 }
 0x101   :  { %v2414_v53 = vpop.f32.mrf.mxu0  ;;  %v2416_v54 = vpop.f32.mrf.mxu1 }
 0x103   :  { %v906_v55 = vpop.f32.mrf.mxu0  ;;  %v1098_v56 = vpop.f32.mrf.mxu1 }
 0x105   :  { %v2418_v57 = vpop.f32.mrf.mxu0  ;;  %v2420_v58 = vpop.f32.mrf.mxu1 }
 0x107   :  { %v909_v59 = vpop.f32.mrf.mxu0  ;;  %v1101_v60 = vpop.f32.mrf.mxu1 }
 0x109   :  { %v912_v61 = vpop.f32.mrf.mxu0  ;;  %v2422_v62 = vpop.f32.mrf.mxu1 }
 0x10b   :  { %v914_v63 = vpop.f32.mrf.mxu0  ;;  %v1106_v0 = vpop.f32.mrf.mxu1 }
 0x10d   :  { %v915_v1 = vpop.f32.mrf.mxu0  ;;  %v2424_v2 = vpop.f32.mrf.mxu1 }
 0x10f   :  { %v917_v3 = vpop.f32.mrf.mxu0  ;;  %v1109_v4 = vpop.f32.mrf.mxu1 }
 0x111   :  { %v2426_v5 = vpop.f32.mrf.mxu0  ;;  %v2428_v6 = vpop.f32.mrf.mxu1 }
 0x113   :  { %v922_v7 = vpop.f32.mrf.mxu0  ;;  %v1114_v8 = vpop.f32.mrf.mxu1 }
 0x115   :  { %v2430_v9 = vpop.f32.mrf.mxu0  ;;  %v2432_v10 = vpop.f32.mrf.mxu1 }
 0x117   :  { %v925_v11 = vpop.f32.mrf.mxu0  ;;  %v1117_v12 = vpop.f32.mrf.mxu1 }
 0x119   :  { %v928_v13 = vpop.f32.mrf.mxu0  ;;  %v2434_v14 = vpop.f32.mrf.mxu1 }
 0x11b   :  { %v930_v15 = vpop.f32.mrf.mxu0  ;;  %v1122_v16 = vpop.f32.mrf.mxu1 }
 0x11d   :  { %v931_v17 = vpop.f32.mrf.mxu0  ;;  %v2436_v18 = vpop.f32.mrf.mxu1 }
 0x11f   :  { %v933_v19 = vpop.f32.mrf.mxu0  ;;  %v1125_v20 = vpop.f32.mrf.mxu1 }
 0x121   :  { %v2438_v21 = vpop.f32.mrf.mxu0  ;;  %v2440_v22 = vpop.f32.mrf.mxu1 }
 0x123   :  { %v938_v23 = vpop.f32.mrf.mxu0  ;;  %v1130_v24 = vpop.f32.mrf.mxu1 }
 0x125   :  { %v2442_v25 = vpop.f32.mrf.mxu0  ;;  %v2444_v26 = vpop.f32.mrf.mxu1 }
 0x127   :  { %v941_v27 = vpop.f32.mrf.mxu0  ;;  %v1133_v28 = vpop.f32.mrf.mxu1 }
 0x129   :  { %v944_v29 = vpop.f32.mrf.mxu0  ;;  %v2446_v30 = vpop.f32.mrf.mxu1 }
 0x12b   :  { %v946_v31 = vpop.f32.mrf.mxu0  ;;  %v1138_v32 = vpop.f32.mrf.mxu1 }
 0x12d   :  { %v947_v33 = vpop.f32.mrf.mxu0  ;;  %v2448_v34 = vpop.f32.mrf.mxu1 }
 0x12f   :  { %v949_v35 = vpop.f32.mrf.mxu0  ;;  %v1141_v36 = vpop.f32.mrf.mxu1 }
 0x131   :  { %v2450_v37 = vpop.f32.mrf.mxu0  ;;  %v2452_v38 = vpop.f32.mrf.mxu1 }
 0x133   :  { %v954_v39 = vpop.f32.mrf.mxu0  ;;  %v1146_v40 = vpop.f32.mrf.mxu1 }
 0x135   :  { %v2454_v41 = vpop.f32.mrf.mxu0  ;;  %v2456_v42 = vpop.f32.mrf.mxu1 }
 0x137   :  { %v957_v43 = vpop.f32.mrf.mxu0  ;;  %v1149_v44 = vpop.f32.mrf.mxu1 }
 0x139   :  { %v960_v45 = vpop.f32.mrf.mxu0  ;;  %v2458_v46 = vpop.f32.mrf.mxu1 }
 0x13b   :  { %v962_v47 = vpop.f32.mrf.mxu0  ;;  %v1154_v48 = vpop.f32.mrf.mxu1 }
 0x13d   :  { %v963_v49 = vpop.f32.mrf.mxu0  ;;  %v2460_v50 = vpop.f32.mrf.mxu1 }
 0x13f   :  { %v965_v51 = vpop.f32.mrf.mxu0  ;;  %v1157_v52 = vpop.f32.mrf.mxu1 }
 0x141   :  { %v2462_v55 = vpop.f32.mrf.mxu0  ;;  %v1718_v56 = vpop.f32.mrf.mxu1 }
 0x142   :  { %v1202_v59 = vadd.f32 %v1718_v56, %v912_v61 }
 0x143   :  { %v970_v60 = vpop.f32.mrf.mxu0  ;;  %v1193_v63 = vpop.f32.mrf.mxu1 }
 0x144   :  { %1450 = vst [vmem:[#allocation2 + $0x10] sm:$0xff] %v1202_v59  ;;  %v1194_v0 = vadd.f32 %v1193_v63, %v2414_v53 }
 0x145   :  { %v2465_v3 = vpop.f32.mrf.mxu0  ;;  %v1719_v4 = vpop.f32.mrf.mxu1 }
 0x146   :  { %1448 = vst [vmem:[#allocation2] sm:$0xff] %v1194_v0  ;;  %v1205_v7 = vadd.f32 %v1719_v4, %v915_v1 }
 0x147   :  { %v973_v8 = vpop.f32.mrf.mxu0  ;;  %v1196_v11 = vpop.f32.mrf.mxu1 }
 0x148   :  { %1451 = vst [vmem:[#allocation2 + $0x18] sm:$0xff] %v1205_v7  ;;  %v1197_v12 = vadd.f32 %v1196_v11, %v2418_v57 }
 0x149   :  { %v976_v15 = vpop.f32.mrf.mxu0  ;;  %v1722_v16 = vpop.f32.mrf.mxu1 }
 0x14a   :  { %1449 = vst [vmem:[#allocation2 + $0x8] sm:$0xff] %v1197_v12  ;;  %v1218_v19 = vadd.f32 %v1722_v16, %v928_v13 }
 0x14b   :  { %v978_v61 = vpop.f32.mrf.mxu0  ;;  %v1209_v20 = vpop.f32.mrf.mxu1 }
 0x14c   :  { %1454 = vst [vmem:[#allocation2 + $0x30] sm:$0xff] %v1218_v19  ;;  %v1210_v23 = vadd.f32 %v1209_v20, %v2426_v5 }
 0x14d   :  { %v979_v53 = vpop.f32.mrf.mxu0  ;;  %v1723_v24 = vpop.f32.mrf.mxu1 }
 0x14e   :  { %1452 = vst [vmem:[#allocation2 + $0x20] sm:$0xff] %v1210_v23  ;;  %v1221_v27 = vadd.f32 %v1723_v24, %v931_v17 }
 0x14f   :  { %v981_v28 = vpop.f32.mrf.mxu0  ;;  %v1212_v1 = vpop.f32.mrf.mxu1 }
 0x150   :  { %1455 = vst [vmem:[#allocation2 + $0x38] sm:$0xff] %v1221_v27  ;;  %v1213_v31 = vadd.f32 %v1212_v1, %v2430_v9 }
 0x151   :  { %v984_v32 = vpop.f32.mrf.mxu0  ;;  %v1726_v57 = vpop.f32.mrf.mxu1 }
 0x152   :  { %1453 = vst [vmem:[#allocation2 + $0x28] sm:$0xff] %v1213_v31  ;;  %v1234_v35 = vadd.f32 %v1726_v57, %v944_v29 }
 0x153   :  { %v986_v36 = vpop.f32.mrf.mxu0  ;;  %v1225_v13 = vpop.f32.mrf.mxu1 }
 0x154   :  { %1458 = vst [vmem:[#allocation2 + $0x50] sm:$0xff] %v1234_v35  ;;  %v1226_v39 = vadd.f32 %v1225_v13, %v2438_v21 }
 0x155   :  { %v987_v40 = vpop.f32.mrf.mxu0  ;;  %v1727_v5 = vpop.f32.mrf.mxu1 }
 0x156   :  { %1456 = vst [vmem:[#allocation2 + $0x40] sm:$0xff] %v1226_v39  ;;  %v1237_v43 = vadd.f32 %v1727_v5, %v947_v33 }
 0x157   :  { %v989_v44 = vpop.f32.mrf.mxu0  ;;  %v1228_v17 = vpop.f32.mrf.mxu1 }
 0x158   :  { %1459 = vst [vmem:[#allocation2 + $0x58] sm:$0xff] %v1237_v43  ;;  %v1229_v47 = vadd.f32 %v1228_v17, %v2442_v25 }
 0x159   :  { %v992_v48 = vpop.f32.mrf.mxu0  ;;  %v1730_v9 = vpop.f32.mrf.mxu1 }
 0x15a   :  { %1457 = vst [vmem:[#allocation2 + $0x48] sm:$0xff] %v1229_v47  ;;  %v1250_v51 = vadd.f32 %v1730_v9, %v960_v45 }
 0x15b   :  { %v994_v52 = vpop.f32.mrf.mxu0  ;;  %v1241_v29 = vpop.f32.mrf.mxu1 }
 0x15c   :  { %1462 = vst [vmem:[#allocation2 + $0x70] sm:$0xff] %v1250_v51  ;;  %v1242_v56 = vadd.f32 %v1241_v29, %v2450_v37 }
 0x15d   :  { %v995_v59 = vpop.f32.mrf.mxu0  ;;  %v1731_v21 = vpop.f32.mrf.mxu1 }
 0x15e   :  { %1460 = vst [vmem:[#allocation2 + $0x60] sm:$0xff] %v1242_v56  ;;  %v1253_v60 = vadd.f32 %v1731_v21, %v963_v49 }
 0x15f   :  { %v997_v63 = vpop.f32.mrf.mxu0  ;;  %v1244_v33 = vpop.f32.mrf.mxu1 }
 0x160   :  { %1463 = vst [vmem:[#allocation2 + $0x78] sm:$0xff] %v1253_v60  ;;  %v1245_v0 = vadd.f32 %v1244_v33, %v2454_v41 }
 0x161   :  { %v1000_v4 = vpop.f32.mrf.mxu0  ;;  %v1734_v25 = vpop.f32.mrf.mxu1 }
 0x162   :  { %1461 = vst [vmem:[#allocation2 + $0x68] sm:$0xff] %v1245_v0  ;;  %v1266_v7 = vadd.f32 %v1734_v25, %v976_v15 }
 0x163   :  { %v1002_v8 = vpop.f32.mrf.mxu0  ;;  %v1257_v45 = vpop.f32.mrf.mxu1 }
 0x164   :  { %1466 = vst [vmem:[#allocation2 + $0x90] sm:$0xff] %v1266_v7  ;;  %v1258_v11 = vadd.f32 %v1257_v45, %v2462_v55 }
 0x165   :  { %v1003_v12 = vpop.f32.mrf.mxu0  ;;  %v1735_v37 = vpop.f32.mrf.mxu1 }
 0x166   :  { %1464 = vst [vmem:[#allocation2 + $0x80] sm:$0xff] %v1258_v11  ;;  %v1269_v16 = vadd.f32 %v1735_v37, %v979_v53 }
 0x167   :  { %v1005_v19 = vpop.f32.mrf.mxu0  ;;  %v1260_v49 = vpop.f32.mrf.mxu1 }
 0x168   :  { %1467 = vst [vmem:[#allocation2 + $0x98] sm:$0xff] %v1269_v16  ;;  %v1261_v61 = vadd.f32 %v1260_v49, %v2465_v3 }
 0x169   :  { %v1008_v20 = vpop.f32.mrf.mxu0  ;;  %v1738_v41 = vpop.f32.mrf.mxu1 }
 0x16a   :  { %1465 = vst [vmem:[#allocation2 + $0x88] sm:$0xff] %v1261_v61  ;;  %v1282_v23 = vadd.f32 %v1738_v41, %v992_v48 }
 0x16b   :  { %v1010_v24 = vpop.f32.mrf.mxu0  ;;  %v1273_v15 = vpop.f32.mrf.mxu1 }
 0x16c   :  { %1470 = vst [vmem:[#allocation2 + $0xb0] sm:$0xff] %v1282_v23  ;;  %v1274_v27 = vadd.f32 %v1273_v15, %v984_v32 }
 0x16d   :  { %v1011_v28 = vpop.f32.mrf.mxu0  ;;  %v1739_v1 = vpop.f32.mrf.mxu1 }
 0x16e   :  { %1468 = vst [vmem:[#allocation2 + $0xa0] sm:$0xff] %v1274_v27  ;;  %v1285_v55 = vadd.f32 %v1739_v1, %v995_v59 }
 0x16f   :  { %v1013_v31 = vpop.f32.mrf.mxu0  ;;  %v1276_v57 = vpop.f32.mrf.mxu1 }
 0x170   :  { %1471 = vst [vmem:[#allocation2 + $0xb8] sm:$0xff] %v1285_v55  ;;  %v1277_v53 = vadd.f32 %v1276_v57, %v987_v40 }
 0x171   :  { %v1016_v35 = vpop.f32.mrf.mxu0  ;;  %v1742_v36 = vpop.f32.mrf.mxu1 }
 0x172   :  { %1469 = vst [vmem:[#allocation2 + $0xa8] sm:$0xff] %v1277_v53  ;;  %v1298_v3 = vadd.f32 %v1742_v36, %v1008_v20 }
 0x173   :  { %v1018_v13 = vpop.f32.mrf.mxu0  ;;  %v1289_v39 = vpop.f32.mrf.mxu1 }
 0x174   :  { %1474 = vst [vmem:[#allocation2 + $0xd0] sm:$0xff] %v1298_v3  ;;  %v1290_v5 = vadd.f32 %v1289_v39, %v1000_v4 }
 0x175   :  { %v1019_v43 = vpop.f32.mrf.mxu0  ;;  %v1743_v44 = vpop.f32.mrf.mxu1 }
 0x176   :  { %1472 = vst [vmem:[#allocation2 + $0xc0] sm:$0xff] %v1290_v5  ;;  %v1301_v32 = vadd.f32 %v1743_v44, %v1011_v28 }
 0x177   :  { %v1021_v17 = vpop.f32.mrf.mxu0  ;;  %v1292_v47 = vpop.f32.mrf.mxu1 }
 0x178   :  { %1475 = vst [vmem:[#allocation2 + $0xd8] sm:$0xff] %v1301_v32  ;;  %v1293_v48 = vadd.f32 %v1292_v47, %v1003_v12 }
 0x179   :  { %v1024_v9 = vpop.f32.mrf.mxu0  ;;  %v1746_v51 = vpop.f32.mrf.mxu1 }
 0x17a   :  { %1473 = vst [vmem:[#allocation2 + $0xc8] sm:$0xff] %v1293_v48  ;;  %v1314_v40 = vadd.f32 %v1746_v51, %v1024_v9 }
 0x17b   :  { %v1026_v52 = vpop.f32.mrf.mxu0  ;;  %v1305_v29 = vpop.f32.mrf.mxu1 }
 0x17c   :  { %1478 = vst [vmem:[#allocation2 + $0xf0] sm:$0xff] %v1314_v40  ;;  %v1306_v56 = vadd.f32 %v1305_v29, %v1016_v35 }
 0x17d   :  { %v1027_v59 = vpop.f32.mrf.mxu0  ;;  %v1747_v21 = vpop.f32.mrf.mxu1 }
 0x17e   :  { %1476 = vst [vmem:[#allocation2 + $0xe0] sm:$0xff] %v1306_v56  ;;  %v1317_v60 = vadd.f32 %v1747_v21, %v1027_v59 }
 0x17f   :  { %v1029_v63 = vpop.f32.mrf.mxu0  ;;  %v1308_v33 = vpop.f32.mrf.mxu1 }
 0x180   :  { %1479 = vst [vmem:[#allocation2 + $0xf8] sm:$0xff] %v1317_v60  ;;  %v1309_v0 = vadd.f32 %v1308_v33, %v1019_v43 }
 0x181   :  { %v1032_v4 = vpop.f32.mrf.mxu0  ;;  %v1750_v25 = vpop.f32.mrf.mxu1 }
 0x182   :  { %1477 = vst [vmem:[#allocation2 + $0xe8] sm:$0xff] %v1309_v0 }
 0x183   :  { %v1034_v7 = vpop.f32.mrf.mxu0  ;;  %v1321_v8 = vpop.f32.mrf.mxu1 }
 0x184   :  { %v1322_v45 = vadd.f32 %v1321_v8, %v1032_v4 }
 0x185   :  { %v1035_v11 = vpop.f32.mrf.mxu0  ;;  %v1751_v12 = vpop.f32.mrf.mxu1 }
 0x186   :  { %1480 = vst [vmem:[#allocation2 + $0x100] sm:$0xff] %v1322_v45 }
 0x187   :  { %v1037_v37 = vpop.f32.mrf.mxu0  ;;  %v1324_v16 = vpop.f32.mrf.mxu1 }
 0x188   :  { %v1325_v19 = vadd.f32 %v1324_v16, %v1035_v11 }
 0x189   :  { %v1040_v49 = vpop.f32.mrf.mxu0  ;;  %v1754_v61 = vpop.f32.mrf.mxu1 }
 0x18a   :  { %1481 = vst [vmem:[#allocation2 + $0x108] sm:$0xff] %v1325_v19  ;;  %v1330_v20 = vadd.f32 %v1750_v25, %v1040_v49 }
 0x18b   :  { %v1042_v41 = vpop.f32.mrf.mxu0  ;;  %v1337_v23 = vpop.f32.mrf.mxu1 }
 0x18c   :  { %1482 = vst [vmem:[#allocation2 + $0x110] sm:$0xff] %v1330_v20 }
 0x18d   :  { %v1043_v24 = vpop.f32.mrf.mxu0  ;;  %v1755_v15 = vpop.f32.mrf.mxu1 }
 0x18e   :  { %v1333_v27 = vadd.f32 %v1751_v12, %v1043_v24 }
 0x18f   :  { %v1045_v28 = vpop.f32.mrf.mxu0  ;;  %v1340_v1 = vpop.f32.mrf.mxu1 }
 0x190   :  { %1483 = vst [vmem:[#allocation2 + $0x118] sm:$0xff] %v1333_v27 }
 0x191   :  { %v1048_v55 = vpop.f32.mrf.mxu0  ;;  %v1758_v31 = vpop.f32.mrf.mxu1 }
 0x192   :  { %v1338_v57 = vadd.f32 %v1337_v23, %v1048_v55 }
 0x193   :  { %v1050_v53 = vpop.f32.mrf.mxu0  ;;  %v1353_v35 = vpop.f32.mrf.mxu1 }
 0x194   :  { %1484 = vst [vmem:[#allocation2 + $0x120] sm:$0xff] %v1338_v57 }
 0x195   :  { %v1051_v36 = vpop.f32.mrf.mxu0  ;;  %v1759_v3 = vpop.f32.mrf.mxu1 }
 0x196   :  { %v1341_v13 = vadd.f32 %v1340_v1, %v1051_v36 }
 0x197   :  { %v1053_v39 = vpop.f32.mrf.mxu0  ;;  %v1356_v5 = vpop.f32.mrf.mxu1 }
 0x198   :  { %1485 = vst [vmem:[#allocation2 + $0x128] sm:$0xff] %v1341_v13 }
 0x199   :  { %v1056_v43 = vpop.f32.mrf.mxu0  ;;  %v2476_v44 = vpop.f32.mrf.mxu1 }
 0x19a   :  { %v1346_v32 = vadd.f32 %v1754_v61, %v1056_v43 }
 0x19b   :  { %v1058_v17 = vpop.f32.mrf.mxu0  ;;  %v1369_v47 = vpop.f32.mrf.mxu1 }
 0x19c   :  { %1486 = vst [vmem:[#allocation2 + $0x130] sm:$0xff] %v1346_v32 }
 0x19d   :  { %v1059_v48 = vpop.f32.mrf.mxu0  ;;  %v2478_v9 = vpop.f32.mrf.mxu1 }
 0x19e   :  { %v1349_v51 = vadd.f32 %v1755_v15, %v1059_v48 }
 0x19f   :  { %v1061_v40 = vpop.f32.mrf.mxu0  ;;  %v1372_v52 = vpop.f32.mrf.mxu1 }
 0x1a0   :  { %1487 = vst [vmem:[#allocation2 + $0x138] sm:$0xff] %v1349_v51 }
 0x1a1   :  { %v1064_v29 = vpop.f32.mrf.mxu0  ;;  %v1766_v56 = vpop.f32.mrf.mxu1 }
 0x1a2   :  { %v1354_v59 = vadd.f32 %v1353_v35, %v1064_v29  ;;  %v1394_v21 = vadd.f32 %v1766_v56, %v2422_v62 }
 0x1a3   :  { %v1066_v60 = vpop.f32.mrf.mxu0  ;;  %v1385_v63 = vpop.f32.mrf.mxu1 }
 0x1a4   :  { %1488 = vst [vmem:[#allocation2 + $0x140] sm:$0xff] %v1354_v59  ;;  %1498 = vst [vmem:[#allocation2 + $0x190] sm:$0xff] %v1394_v21  ;;  %v1386_v33 = vadd.f32 %v1385_v63, %v2416_v54 }
 0x1a5   :  { %v1067_v0 = vpop.f32.mrf.mxu0  ;;  %v1767_v4 = vpop.f32.mrf.mxu1 }
 0x1a6   :  { %1496 = vst [vmem:[#allocation2 + $0x180] sm:$0xff] %v1386_v33  ;;  %v1357_v25 = vadd.f32 %v1356_v5, %v1067_v0  ;;  %v1397_v7 = vadd.f32 %v1767_v4, %v2424_v2 }
 0x1a7   :  { %v1069_v8 = vpop.f32.mrf.mxu0  ;;  %v1388_v45 = vpop.f32.mrf.mxu1 }
 0x1a8   :  { %1489 = vst [vmem:[#allocation2 + $0x148] sm:$0xff] %v1357_v25  ;;  %1499 = vst [vmem:[#allocation2 + $0x198] sm:$0xff] %v1397_v7  ;;  %v1389_v11 = vadd.f32 %v1388_v45, %v2420_v58 }
 0x1a9   :  { %v1072_v12 = vpop.f32.mrf.mxu0  ;;  %v1770_v62 = vpop.f32.mrf.mxu1 }
 0x1aa   :  { %1497 = vst [vmem:[#allocation2 + $0x188] sm:$0xff] %v1389_v11  ;;  %v1362_v37 = vadd.f32 %v1758_v31, %v1072_v12  ;;  %v1410_v16 = vadd.f32 %v1770_v62, %v2434_v14 }
 0x1ab   :  { %v1074_v19 = vpop.f32.mrf.mxu0  ;;  %v1401_v54 = vpop.f32.mrf.mxu1 }
 0x1ac   :  { %1490 = vst [vmem:[#allocation2 + $0x150] sm:$0xff] %v1362_v37  ;;  %1502 = vst [vmem:[#allocation2 + $0x1b0] sm:$0xff] %v1410_v16  ;;  %v1402_v49 = vadd.f32 %v1401_v54, %v2428_v6 }
 0x1ad   :  { %v1075_v61 = vpop.f32.mrf.mxu0  ;;  %v1771_v2 = vpop.f32.mrf.mxu1 }
 0x1ae   :  { %1500 = vst [vmem:[#allocation2 + $0x1a0] sm:$0xff] %v1402_v49  ;;  %v1365_v20 = vadd.f32 %v1759_v3, %v1075_v61  ;;  %v1413_v41 = vadd.f32 %v1771_v2, %v2436_v18 }
 0x1af   :  { %v1077_v23 = vpop.f32.mrf.mxu0  ;;  %v1404_v58 = vpop.f32.mrf.mxu1 }
 0x1b0   :  { %1491 = vst [vmem:[#allocation2 + $0x158] sm:$0xff] %v1365_v20  ;;  %1503 = vst [vmem:[#allocation2 + $0x1b8] sm:$0xff] %v1413_v41  ;;  %v1405_v24 = vadd.f32 %v1404_v58, %v2432_v10 }
 0x1b1   :  { %v1080_v15 = vpop.f32.mrf.mxu0  ;;  %v1774_v14 = vpop.f32.mrf.mxu1 }
 0x1b2   :  { %1501 = vst [vmem:[#allocation2 + $0x1a8] sm:$0xff] %v1405_v24  ;;  %v1370_v27 = vadd.f32 %v1369_v47, %v1080_v15  ;;  %v1426_v28 = vadd.f32 %v1774_v14, %v2446_v30 }
 0x1b3   :  { %v1082_v1 = vpop.f32.mrf.mxu0  ;;  %v1417_v6 = vpop.f32.mrf.mxu1 }
 0x1b4   :  { %1492 = vst [vmem:[#allocation2 + $0x160] sm:$0xff] %v1370_v27  ;;  %1506 = vst [vmem:[#allocation2 + $0x1d0] sm:$0xff] %v1426_v28  ;;  %v1418_v55 = vadd.f32 %v1417_v6, %v2440_v22 }
 0x1b5   :  { %v1083_v31 = vpop.f32.mrf.mxu0  ;;  %v1775_v18 = vpop.f32.mrf.mxu1 }
 0x1b6   :  { %1504 = vst [vmem:[#allocation2 + $0x1c0] sm:$0xff] %v1418_v55  ;;  %v1373_v57 = vadd.f32 %v1372_v52, %v1083_v31  ;;  %v1429_v53 = vadd.f32 %v1775_v18, %v2448_v34 }
 0x1b7   :  { %v1085_v35 = vpop.f32.mrf.mxu0  ;;  %v1420_v10 = vpop.f32.mrf.mxu1 }
 0x1b8   :  { %1493 = vst [vmem:[#allocation2 + $0x168] sm:$0xff] %v1373_v57  ;;  %1507 = vst [vmem:[#allocation2 + $0x1d8] sm:$0xff] %v1429_v53  ;;  %v1421_v36 = vadd.f32 %v1420_v10, %v2444_v26 }
 0x1b9   :  { %v1088_v3 = vpop.f32.mrf.mxu0  ;;  %v1778_v30 = vpop.f32.mrf.mxu1 }
 0x1ba   :  { %1505 = vst [vmem:[#allocation2 + $0x1c8] sm:$0xff] %v1421_v36  ;;  %v1378_v13 = vadd.f32 %v2476_v44, %v1088_v3  ;;  %v1442_v39 = vadd.f32 %v1778_v30, %v2458_v46 }
 0x1bb   :  { %v1090_v22 = vpop.f32.mrf.mxu0  ;;  %v1433_v5 = vpop.f32.mrf.mxu1 }
 0x1bc   :  { %1494 = vst [vmem:[#allocation2 + $0x170] sm:$0xff] %v1378_v13  ;;  %1510 = vst [vmem:[#allocation2 + $0x1f0] sm:$0xff] %v1442_v39  ;;  %v1434_v43 = vadd.f32 %v1433_v5, %v2452_v38 }
 0x1bd   :  { %v1091_v34 = vpop.f32.mrf.mxu0  ;;  %v1779_v32 = vpop.f32.mrf.mxu1 }
 0x1be   :  { %1508 = vst [vmem:[#allocation2 + $0x1e0] sm:$0xff] %v1434_v43  ;;  %v1381_v26 = vadd.f32 %v2478_v9, %v1091_v34  ;;  %v1445_v17 = vadd.f32 %v1779_v32, %v2460_v50 }
 0x1bf   :  { %v1093_v47 = vpop.f32.mrf.mxu0  ;;  %v1436_v48 = vpop.f32.mrf.mxu1 }
 0x1c0   :  { %1495 = vst [vmem:[#allocation2 + $0x178] sm:$0xff] %v1381_v26  ;;  %1511 = vst [vmem:[#allocation2 + $0x1f8] sm:$0xff] %v1445_v17  ;;  %v1437_v46 = vadd.f32 %v1436_v48, %v2456_v42 }
 0x1c2   :  { %1509 = vst [vmem:[#allocation2 + $0x1e8] sm:$0xff] %v1437_v46 }
 0x1c3   :  { %1975 = shalt.err (!%p1972_p4)
}
 0x1c4   :  { %s1988_s1 = smov 128   ;;  %s1989_s11 = smov 8  }
 0x1c5   :  { %1523 = dma.vmem_to_hbm [thread:$0]  %s1518_s9, 8192, %s2503_s2, [#allocation3], %s1988_s1, %s1988_s1, %s1989_s11  }
 0x1c6   :  { %1984 = dma.done.wait [#allocation3], 8192  }
 0x1c7   :  { %1985 = vsyncadd [#allocation3], 4294959104 }
 0x1c8   :  { %1527 = vsyncpa [#allocation3], 1 }

</bundles_post_ra>
